<compile_context>
chip_gen: v6e
topology: v6e:2x2x1
jax: 0.10.0
libtpu: 0.0.40
codegen_flags: <defaults>
</compile_context>

<pallas_src>
import functools

import jax
import jax.numpy as jnp
from jax import lax
from jax.experimental import pallas as pl
from jax.experimental.pallas import tpu as pltpu


def _ma_kernel(targets_ref, ref_tgt_ref, cls_ref, g_ref, out_ref,
               acc_ref, cnt_ref, *, normalize_cls):
    # targets_ref : (1, block_n) int32      -- targets slice for this block
    # ref_tgt_ref : (M, 1)       int32      -- targets[i*num_pos] per group
    # cls_ref     : (block_n, D) feature dtype (f32 / bf16)
    # g_ref       : (block_n, D) feature dtype
    # out_ref     : (1, 1) f32 in SMEM      -- scalar result
    # acc_ref     : (M, D) f32 VMEM scratch -- sum_n mask * (cls - g)
    # cnt_ref     : (M, 1) f32 VMEM scratch -- per-group row counts
    step = pl.program_id(0)

    @pl.when(step == 0)
    def _init():
        acc_ref[...] = jnp.zeros_like(acc_ref)
        cnt_ref[...] = jnp.zeros_like(cnt_ref)

    # Mask cast once (f32); reused for the count reduction and the MXU operand.
    mask_f = (ref_tgt_ref[...] == targets_ref[...]).astype(jnp.float32)  # (M, bn)
    cnt_ref[...] += jnp.sum(mask_f, axis=1, keepdims=True)

    # Upcast to f32 in-kernel (HBM DMA stays in the native dtype).
    cls_blk = cls_ref[...].astype(jnp.float32)                           # (bn, D)
    g_blk = g_ref[...].astype(jnp.float32)                               # (bn, D)
    if normalize_cls:
        # Fused F.normalize(cls, p=2, dim=-1): x / max(||x||, 1e-12).
        sq = jnp.sum(cls_blk * cls_blk, axis=1, keepdims=True)
        cls_blk = cls_blk * lax.rsqrt(jnp.maximum(sq, 1e-24))

    diff = cls_blk - g_blk                                               # VPU
    acc_ref[...] += jnp.dot(mask_f, diff, preferred_element_type=jnp.float32)

    @pl.when(step == pl.num_programs(0) - 1)
    def _finalize():
        counts = cnt_ref[...]
        # NOTE: a zero-count group yields inf/NaN, matching PyTorch's 0/0 mean.
        inv = 1.0 / counts
        s = acc_ref[...]
        d2 = jnp.sum(s * s, axis=1, keepdims=True) * (inv * inv)        # ||fc-gc||^2
        dist = jnp.sqrt(jnp.maximum(d2, 1e-12))                          # (M, 1)
        m = dist.shape[0]
        out_ref[0, 0] = jnp.sum(dist) * (1.0 / m)


def _pick_block_n(n, d, itemsize):
    """Largest lane-aligned divisor of N that keeps per-step VMEM modest."""
    budget = 24 * 1024 * 1024  # leave headroom under the 32 MiB scoped default
    for cand in (1024, 512, 384, 256, 128):
        if n % cand:
            continue
        # 2 inputs x 2 double-buffers in native dtype + ~3 f32 in-kernel temps.
        est = cand * d * (4 * itemsize + 3 * 4)
        if est <= budget:
            return cand
    return n  # fallback: single whole-array block


def ma_forward(cls_feature, g_feature, targets, num_pos, feat_norm="no",
               method="eucilidean", block_n=None):
    """Pallas implementation of MA.forward."""
    cls_feature = jnp.asarray(cls_feature)
    g_feature = jnp.asarray(g_feature)
    targets = jnp.asarray(targets)

    N, D = cls_feature.shape
    id_num = N // 3 // num_pos
    assert id_num >= 1, "need at least one identity group"

    if method == "cosine":
        # TODO(synk): cosine branch kept in plain JAX (not the hot path).
        cls = cls_feature.astype(jnp.float32)
        if feat_norm == "yes":
            cls = cls / jnp.maximum(
                jnp.linalg.norm(cls, axis=-1, keepdims=True), 1e-12)
        ref_idx = jnp.arange(id_num, dtype=jnp.int32) * num_pos
        ref_tgt = targets[ref_idx].astype(jnp.int32).reshape(id_num, 1)
        mask = (ref_tgt == targets.astype(jnp.int32).reshape(1, N)).astype(jnp.float32)
        counts = mask.sum(axis=1, keepdims=True)
        fc = (mask @ cls) / counts
        gc = (mask @ g_feature.astype(jnp.float32)) / counts
        cos = jnp.sum(fc * gc, axis=1) / (
            jnp.linalg.norm(fc, axis=1) * jnp.linalg.norm(gc, axis=1))
        return jnp.mean(cos)
    if method != "eucilidean":
        print("unsupported method!!")
        return None

    # Glue: reference target per group (targets[i*num_pos]) and 2-D targets.
    ref_idx = jnp.arange(id_num, dtype=jnp.int32) * num_pos
    ref_tgt = targets[ref_idx].astype(jnp.int32).reshape(id_num, 1)
    targets_2d = targets.astype(jnp.int32).reshape(1, N)

    if block_n is None:
        block_n = _pick_block_n(N, D, cls_feature.dtype.itemsize)
    assert N % block_n == 0, "block_n must divide N"
    assert block_n == N or block_n % 128 == 0, "block_n must be lane-aligned"
    num_blocks = N // block_n

    kernel = functools.partial(_ma_kernel, normalize_cls=(feat_norm == "yes"))

    bytes_in = (N * D * (cls_feature.dtype.itemsize + g_feature.dtype.itemsize)
                + N * 4 + id_num * 4 + 4)
    cost = pl.CostEstimate(
        flops=2 * id_num * N * D + 4 * N * D,
        transcendentals=id_num + (N if feat_norm == "yes" else 0),
        bytes_accessed=bytes_in)

    out = pl.pallas_call(
        kernel,
        out_shape=jax.ShapeDtypeStruct((1, 1), jnp.float32),
        grid=(num_blocks,),
        in_specs=[
            pl.BlockSpec((1, block_n), lambda i: (0, i)),       # targets slice
            pl.BlockSpec((id_num, 1), lambda i: (0, 0)),        # group ref targets
            pl.BlockSpec((block_n, D), lambda i: (i, 0)),       # cls block
            pl.BlockSpec((block_n, D), lambda i: (i, 0)),       # g block
        ],
        out_specs=pl.BlockSpec(memory_space=pltpu.MemorySpace.SMEM),
        scratch_shapes=[
            pltpu.VMEM((id_num, D), jnp.float32),               # sum of masked diff
            pltpu.VMEM((id_num, 1), jnp.float32),               # group counts
        ],
        compiler_params=pltpu.CompilerParams(
            dimension_semantics=("arbitrary",)),
        cost_estimate=cost,
    )(targets_2d, ref_tgt, cls_feature, g_feature)
    return out[0, 0]


def _ma_reference(cls_feature, g_feature, targets, num_pos, feat_norm="no"):
    """Pure-JAX reference mirroring the PyTorch code (full pdist + diag)."""
    cls_feature = jnp.asarray(cls_feature, jnp.float32)
    g_feature = jnp.asarray(g_feature, jnp.float32)
    if feat_norm == "yes":
        cls_feature = cls_feature / jnp.maximum(
            jnp.linalg.norm(cls_feature, axis=-1, keepdims=True), 1e-12)
    N, _ = cls_feature.shape
    id_num = N // 3 // num_pos
    fcs, gcs = [], []
    for i in range(id_num):
        m = targets == targets[i * num_pos]
        cnt = jnp.sum(m)
        fcs.append(jnp.sum(jnp.where(m[:, None], cls_feature, 0.0), axis=0) / cnt)
        gcs.append(jnp.sum(jnp.where(m[:, None], g_feature, 0.0), axis=0) / cnt)
    fc = jnp.stack(fcs)
    gc = jnp.stack(gcs)
    d2 = (jnp.sum(fc**2, 1)[:, None] + jnp.sum(gc**2, 1)[None, :]
          - 2.0 * fc @ gc.T)
    dist = jnp.sqrt(jnp.clip(d2, 1e-12))
    return jnp.mean(jnp.diag(dist))


if __name__ == "__main__":
    key = jax.random.PRNGKey(0)
    k1, k2, k3, k4 = jax.random.split(key, 4)

    # --- Test 1: tiny shapes, single-block path ---
    num_pos = 4
    id_num = 2
    N = 3 * id_num * num_pos          # 24
    D = 32
    cls1 = jax.random.normal(k1, (N, D), dtype=jnp.float32)
    g1 = jax.random.normal(k2, (N, D), dtype=jnp.float32)
    tgt1 = jnp.tile(jnp.repeat(jnp.arange(id_num, dtype=jnp.int32), num_pos), 3)

    out1 = jax.block_until_ready(ma_forward(cls1, g1, tgt1, num_pos))
    ref1 = _ma_reference(cls1, g1, tgt1, num_pos)
    assert jnp.allclose(out1, ref1, rtol=1e-5, atol=1e-5), (out1, ref1)

    # --- Test 2: multi-block N-grid path (N=384, block_n=128 -> 3 grid steps) ---
    num_pos2 = 16
    id_num2 = 8
    N2 = 3 * id_num2 * num_pos2       # 384
    D2 = 128
    cls2 = jax.random.normal(k3, (N2, D2), dtype=jnp.float32)
    g2 = jax.random.normal(k4, (N2, D2), dtype=jnp.float32)
    tgt2 = jnp.tile(jnp.repeat(jnp.arange(id_num2, dtype=jnp.int32), num_pos2), 3)

    out2 = jax.block_until_ready(ma_forward(cls2, g2, tgt2, num_pos2, block_n=128))
    ref2 = _ma_reference(cls2, g2, tgt2, num_pos2)
    assert jnp.allclose(out2, ref2, rtol=1e-5, atol=1e-5), (out2, ref2)

    # --- Test 3: fused feat_norm == 'yes' path ---
    out3 = jax.block_until_ready(
        ma_forward(cls2, g2, tgt2, num_pos2, feat_norm="yes", block_n=128))
    ref3 = _ma_reference(cls2, g2, tgt2, num_pos2, feat_norm="yes")
    assert jnp.allclose(out3, ref3, rtol=1e-5, atol=1e-5), (out3, ref3)

    print("KERNEL_OK")
</pallas_src>

<mosaic_0001>
module attributes {stable_mosaic.version = 11 : i64} {
  func.func @_ma_kernel(%arg0: i32, %arg1: memref<1x24xi32, #tpu.memory_space<vmem>>, %arg2: memref<2x1xi32, #tpu.memory_space<vmem>>, %arg3: memref<24x32xf32, #tpu.memory_space<vmem>>, %arg4: memref<24x32xf32, #tpu.memory_space<vmem>>, %arg5: memref<1x1xf32, #tpu.memory_space<smem>>, %arg6: memref<2x32xf32, #tpu.memory_space<vmem>>, %arg7: memref<2x1xf32, #tpu.memory_space<vmem>>) attributes {dimension_semantics = [#tpu.dimension_semantics<arbitrary>], iteration_bounds = array<i64: 1>, scalar_prefetch = 0 : i64, scratch_operands = 2 : i64, tpu.core_type = #tpu.core_type<tc>, window_params = [{transform_indices = @transform_0, window_bounds = array<i64: 1, 24>}, {pipeline_mode = #tpu.pipeline_mode<synchronous>, transform_indices = @transform_1, window_bounds = array<i64: 2, 1>}, {transform_indices = @transform_2, window_bounds = array<i64: 24, 32>}, {transform_indices = @transform_3, window_bounds = array<i64: 24, 32>}, {transform_indices = @transform_4, window_bounds = array<i64: 1, 1>}]} {
    %c0_i32 = arith.constant 0 : i32
    %0 = arith.cmpi eq, %arg0, %c0_i32 : i32
    %1 = arith.extui %0 : i1 to i32
    %c0_i32_0 = arith.constant 0 : i32
    %2 = arith.cmpi ne, %1, %c0_i32_0 : i32
    scf.if %2 {
      %cst_19 = arith.constant 0.000000e+00 : f32
      %25 = vector.broadcast %cst_19 : f32 to vector<2x32xf32>
      %c0_20 = arith.constant 0 : index
      %c0_21 = arith.constant 0 : index
      %26 = vector.load %arg6[%c0_20, %c0_21] : memref<2x32xf32, #tpu.memory_space<vmem>>, vector<2x32xf32>
      tpu.vector_store %arg6[%c0_20, %c0_21], %25 {strides = array<i32>} : memref<2x32xf32, #tpu.memory_space<vmem>>, vector<2x32xf32>,
      %cst_22 = arith.constant 0.000000e+00 : f32
      %27 = vector.broadcast %cst_22 : f32 to vector<2x1xf32>
      %c0_23 = arith.constant 0 : index
      %c0_24 = arith.constant 0 : index
      %28 = vector.load %arg7[%c0_23, %c0_24] : memref<2x1xf32, #tpu.memory_space<vmem>>, vector<2x1xf32>
      tpu.vector_store %arg7[%c0_23, %c0_24], %27 {strides = array<i32>} : memref<2x1xf32, #tpu.memory_space<vmem>>, vector<2x1xf32>,
    } else {
    }
    %c0 = arith.constant 0 : index
    %c0_1 = arith.constant 0 : index
    %3 = vector.load %arg2[%c0, %c0_1] : memref<2x1xi32, #tpu.memory_space<vmem>>, vector<2x1xi32>
    %c0_2 = arith.constant 0 : index
    %c0_3 = arith.constant 0 : index
    %4 = vector.load %arg1[%c0_2, %c0_3] : memref<1x24xi32, #tpu.memory_space<vmem>>, vector<1x24xi32>
    %5 = vector.broadcast %3 : vector<2x1xi32> to vector<2x24xi32>
    %6 = vector.broadcast %4 : vector<1x24xi32> to vector<2x24xi32>
    %7 = arith.cmpi eq, %5, %6 : vector<2x24xi32>
    %8 = arith.extui %7 : vector<2x24xi1> to vector<2x24xi32>
    %9 = arith.sitofp %8 : vector<2x24xi32> to vector<2x24xf32>
    %c0_4 = arith.constant 0 : index
    %c0_5 = arith.constant 0 : index
    %10 = vector.load %arg7[%c0_4, %c0_5] : memref<2x1xf32, #tpu.memory_space<vmem>>, vector<2x1xf32>
    %cst = arith.constant dense<0.000000e+00> : vector<2xf32>
    %11 = vector.multi_reduction <add>, %9, %cst [1] : vector<2x24xf32> to vector<2xf32>
    %12 = vector.shape_cast %11 : vector<2xf32> to vector<2x1xf32>
    %13 = arith.addf %10, %12 : vector<2x1xf32>
    %c0_6 = arith.constant 0 : index
    %c0_7 = arith.constant 0 : index
    %14 = vector.load %arg7[%c0_6, %c0_7] : memref<2x1xf32, #tpu.memory_space<vmem>>, vector<2x1xf32>
    tpu.vector_store %arg7[%c0_6, %c0_7], %13 {strides = array<i32>} : memref<2x1xf32, #tpu.memory_space<vmem>>, vector<2x1xf32>,
    %c0_8 = arith.constant 0 : index
    %c0_9 = arith.constant 0 : index
    %15 = vector.load %arg3[%c0_8, %c0_9] : memref<24x32xf32, #tpu.memory_space<vmem>>, vector<24x32xf32>
    %c0_10 = arith.constant 0 : index
    %c0_11 = arith.constant 0 : index
    %16 = vector.load %arg4[%c0_10, %c0_11] : memref<24x32xf32, #tpu.memory_space<vmem>>, vector<24x32xf32>
    %17 = arith.subf %15, %16 : vector<24x32xf32>
    %c0_12 = arith.constant 0 : index
    %c0_13 = arith.constant 0 : index
    %18 = vector.load %arg6[%c0_12, %c0_13] : memref<2x32xf32, #tpu.memory_space<vmem>>, vector<2x32xf32>
    %cst_14 = arith.constant dense<0.000000e+00> : vector<2x32xf32>
    %19 = tpu.matmul %9, %17, %cst_14 {dimension_numbers = #tpu.dot_dimension_numbers<[1], [0], [0], [1], [0, 0, 1, 1], [], []>} : vector<2x24xf32>, vector<24x32xf32>, vector<2x32xf32> -> vector<2x32xf32>
    %20 = arith.addf %18, %19 : vector<2x32xf32>
    %c0_15 = arith.constant 0 : index
    %c0_16 = arith.constant 0 : index
    %21 = vector.load %arg6[%c0_15, %c0_16] : memref<2x32xf32, #tpu.memory_space<vmem>>, vector<2x32xf32>
    tpu.vector_store %arg6[%c0_15, %c0_16], %20 {strides = array<i32>} : memref<2x32xf32, #tpu.memory_space<vmem>>, vector<2x32xf32>,
    %c0_i32_17 = arith.constant 0 : i32
    %22 = arith.cmpi eq, %arg0, %c0_i32_17 : i32
    %23 = arith.extui %22 : i1 to i32
    %c0_i32_18 = arith.constant 0 : i32
    %24 = arith.cmpi ne, %23, %c0_i32_18 : i32
    scf.if %24 {
      %c0_19 = arith.constant 0 : index
      %c0_20 = arith.constant 0 : index
      %25 = vector.load %arg7[%c0_19, %c0_20] : memref<2x1xf32, #tpu.memory_space<vmem>>, vector<2x1xf32>
      %cst_21 = arith.constant 1.000000e+00 : f32
      %26 = vector.broadcast %cst_21 : f32 to vector<2x1xf32>
      %27 = arith.divf %26, %25 : vector<2x1xf32>
      %c0_22 = arith.constant 0 : index
      %c0_23 = arith.constant 0 : index
      %28 = vector.load %arg6[%c0_22, %c0_23] : memref<2x32xf32, #tpu.memory_space<vmem>>, vector<2x32xf32>
      %29 = arith.mulf %28, %28 : vector<2x32xf32>
      %cst_24 = arith.constant dense<0.000000e+00> : vector<2xf32>
      %30 = vector.multi_reduction <add>, %29, %cst_24 [1] : vector<2x32xf32> to vector<2xf32>
      %31 = vector.shape_cast %30 : vector<2xf32> to vector<2x1xf32>
      %32 = arith.mulf %27, %27 : vector<2x1xf32>
      %33 = arith.mulf %31, %32 : vector<2x1xf32>
      %cst_25 = arith.constant 9.99999996E-13 : f32
      %34 = vector.broadcast %cst_25 : f32 to vector<2x1xf32>
      %35 = arith.maximumf %33, %34 : vector<2x1xf32>
      %36 = math.sqrt %35 : vector<2x1xf32>
      %37 = vector.shape_cast %36 : vector<2x1xf32> to vector<1x2x1xf32>
      %cst_26 = arith.constant dense<0.000000e+00> : vector<1xf32>
      %38 = vector.multi_reduction <add>, %37, %cst_26 [1, 2] : vector<1x2x1xf32> to vector<1xf32>
      %39 = vector.shape_cast %38 : vector<1xf32> to vector<1x1x1xf32>
      %40 = vector.extract %39[0, 0, 0] : f32 from vector<1x1x1xf32>
      %cst_27 = arith.constant 5.000000e-01 : f32
      %41 = arith.mulf %40, %cst_27 : f32
      %c0_28 = arith.constant 0 : index
      %c0_29 = arith.constant 0 : index
      %42 = memref.load %arg5[%c0_28, %c0_29] : memref<1x1xf32, #tpu.memory_space<smem>>
      memref.store %41, %arg5[%c0_28, %c0_29] : memref<1x1xf32, #tpu.memory_space<smem>>
    } else {
    }
    return
  }
  func.func @transform_0(%arg0: i32) -> (i32, i32) {
    %c0_i32 = arith.constant 0 : i32
    %c0_i32_0 = arith.constant 0 : i32
    return %c0_i32, %arg0 : i32, i32
  }
  func.func @transform_1(%arg0: i32) -> (i32, i32) {
    %c0_i32 = arith.constant 0 : i32
    %c0_i32_0 = arith.constant 0 : i32
    %c0_i32_1 = arith.constant 0 : i32
    return %c0_i32, %c0_i32_0 : i32, i32
  }
  func.func @transform_2(%arg0: i32) -> (i32, i32) {
    %c0_i32 = arith.constant 0 : i32
    %c0_i32_0 = arith.constant 0 : i32
    return %arg0, %c0_i32 : i32, i32
  }
  func.func @transform_3(%arg0: i32) -> (i32, i32) {
    %c0_i32 = arith.constant 0 : i32
    %c0_i32_0 = arith.constant 0 : i32
    return %arg0, %c0_i32 : i32, i32
  }
  func.func @transform_4(%arg0: i32) -> (i32, i32) {
    %c0_i32 = arith.constant 0 : i32
    %c0_i32_0 = arith.constant 0 : i32
    %c0_i32_1 = arith.constant 0 : i32
    return %c0_i32, %c0_i32_0 : i32, i32
  }
}

</mosaic_0001>

<bundles_post_ra>
// kernel: tpu_custom_call.1
= control target key start
LH: loop header
LB: loop body
LE: loop exit
PB: predicated region body
PF: predicated region fallthrough
CT: control target
= control target key end

     0   :  { %9 = vsyncpa [#allocation5], 0  ;;  %s346_s0 = inlined_call_operand.vmem [shape: s32[1,24], index: 0, kind: input, shape index: {}]   ;;  %s347_s1 = inlined_call_operand.vmem [shape: s32[2,1], index: 1, kind: input, shape index: {}]   ;;  %s348_s2 = inlined_call_operand.hbm [shape: f32[24,32], index: 2, kind: input, shape index: {}]   ;;  %s349_s3 = inlined_call_operand.hbm [shape: f32[24,32], index: 3, kind: input, shape index: {}]   ;;  %s350_s4 = inlined_call_operand.hbm [shape: f32[1,1], index: 4, kind: output, shape index: {}]  }
   0x1   :  { %10 = vsyncpa [#allocation8], 0 }
   0x2   :  { %11 = vsyncpa [#allocation6], 0  ;;  %s295_s15 = smov [#allocation4]  }
   0x3   :  { %s21_s16 = sshll.u32 %s295_s15, 4  ;;  %s22_s16 = int_to_ptr.vmem [resolvable:$true] %s21_s16 }
   0x4   :  { %s249_s17 = scalar_lea.vmem %s22_s16, 384  ;;  %p254_p1 = scmp.lt.s32.totalorder %s22_s16, %s22_s16 }
   0x5   :  { %p250_p0 = scmp.ne.s32.totalorder %s22_s16, %s249_s17  ;;  %p255_p2 = scmp.lt.s32.totalorder %s249_s17, %s249_s17 }
   0x7   :  { %p256_p3 = por %p255_p2, %p254_p1 }
   0x9   :  { %p257_p4 = pnand %p256_p3, %p250_p0 }
   0xb   :  { %260 = shalt.err (!%p257_p4)
}
   0xc   :  { %s296_s18 = smov 128   ;;  %s297_s19 = smov 8  }
   0xd   :  { %27 = dma.hbm_to_vmem [thread:$0]  %s348_s2, 384, %s22_s16, [#allocation5], %s296_s18, %s296_s18, %s297_s19  }
   0xe   :  { %s298_s22 = smov [#allocation7]  }
   0xf   :  { %s33_s23 = sshll.u32 %s298_s22, 4  ;;  %s34_s23 = int_to_ptr.vmem [resolvable:$true] %s33_s23 }
  0x10   :  { %s269_s24 = scalar_lea.vmem %s34_s23, 384  ;;  %p274_p6 = scmp.lt.s32.totalorder %s34_s23, %s34_s23 }
  0x11   :  { %p270_p5 = scmp.ne.s32.totalorder %s34_s23, %s269_s24  ;;  %p275_p7 = scmp.lt.s32.totalorder %s269_s24, %s269_s24 }
  0x13   :  { %p276_p8 = por %p275_p7, %p274_p6 }
  0x15   :  { %p277_p9 = pnand %p276_p8, %p270_p5 }
  0x17   :  { %280 = shalt.err (!%p277_p9)
}
  0x18   :  { %39 = dma.hbm_to_vmem [thread:$0]  %s349_s3, 384, %s34_s23, [#allocation8], %s296_s18, %s296_s18, %s297_s19  }
  0x19   :  { %289 = dma.done.wait [#allocation5], 384  }
  0x1a   :  { %290 = vsyncadd [#allocation5], 4294966912 }
  0x1b   :  { %291 = dma.done.wait [#allocation8], 384  }
  0x1c   :  { %292 = vsyncadd [#allocation8], 4294966912  ;;  %v299_v0 = vmov 0   ;;  %v300_v1 = vmov 0.0   ;;  %vm301_vm0 = vmmov 0   ;;  %v76_v3 = vld [vmem:[#allocation4 + $0x10] sm:$0xff] }
  0x1d   :  { %236 = vset.pattern.permute.xlu0 %v299_v0  ;;  %217 = vmatprep.subr.mxu0 %v300_v1  ;;  %v54_v2 = vld [vmem:[%s347_s1] sm:$0x3]  ;;  %v79_v4 = vld [vmem:[#allocation7 + $0x10] sm:$0xff]  ;;  %vm52_vm1 = vcmask 1024   ;;  %v78_v7 = vld [vmem:[#allocation7 + $0x8] sm:$0xff]  ;;  %vm84_vm2 = vcmask 195584  }
  0x1e   :  { %223 = vmatprep.mubr.msk.f32.mxu0 %vm301_vm0, %v300_v1  ;;  %57 = vperm.xlu0 %236, %v54_v2   ;;  %v82_v5 = vsub.f32 %v76_v3, %v79_v4  ;;  %v75_v6 = vld [vmem:[#allocation4 + $0x8] sm:$0xff]  ;;  %53 = vst.msk [vmem:[#allocation3] sm:$0x3] %vm52_vm1, %v300_v1  ;;  %v74_v9 = vld [vmem:[#allocation4] sm:$0xff]  ;;  %v77_v10 = vld [vmem:[#allocation7] sm:$0xff]  ;;  %vm67_vm3 = vcmask 189440  }
  0x1f   :  { %v81_v8 = vsub.f32 %v75_v6, %v78_v7  ;;  %v80_v11 = vsub.f32 %v74_v9, %v77_v10  ;;  %v210_v12 = vld [vmem:[%s346_s0] ss:$0 sm:$0xff]  ;;  %vm50_vm5 = vcmask 254976   ;;  %s302_s29 = smov [#allocation9]  }
  0x20   :  { %218 = vmatpush3.msra.mxu0 %v82_v5  ;;  %51 = vst.msk [vmem:[#allocation2] sm:$0x3] %vm50_vm5, %v300_v1 }
  0x21   :  { %219 = vmatprep.subr.mxu0 %v300_v1 }
  0x22   :  { %220 = vmatpush3.msra.mxu0 %v81_v8 }
  0x23   :  { %221 = vmatprep.subr.mxu0 %v300_v1 }
  0x24   :  { %222 = vmatpush3.msra.mxu0 %v80_v11 }
  0x25   :  { %v66_v16 = vld [vmem:[#allocation3] sm:$0x3] }
  0x27   :  { %v83_v19 = vld [vmem:[#allocation2] sm:$0x3] }
  0x99   :  { %v58_v13 = vpop.permute.xlu0 %57 }
  0x9a   :  { %vm63_vm4 = vcmp.eq.s32.totalorder %v58_v13, %v210_v12 }
  0x9b   :  { %v211_v14 = vsel %vm63_vm4, 1.0, %v300_v1 }
  0x9c   :  { %224 = vmatmul.mubr.msk.f32.vlgmr.msra.gmra.mxu0 %vm84_vm2, %v211_v14  ;;  %v68_v15 = vsel %vm67_vm3, %v211_v14, 0.0 }
  0x9d   :  { %69 = vadd.xlane.f32.xlu0 %v68_v15 }
 0x126   :  { %v70_v17 = vpop.xlane.xlu0 %69 }
 0x127   :  { %v71_v18 = vadd.f32 %v70_v17, %v66_v16 }
 0x129   :  { %73 = vst.msk [vmem:[#allocation3] sm:$0x3] %vm52_vm1, %v71_v18 }
 0x130   :  { %v164_v26 = vld [vmem:[#allocation3] sm:$0x3] }
 0x131   :  { %237 = vrcp.f32 %v164_v26 }
 0x13e   :  { %v238_v27 = vpop.eup %237 }
 0x13f   :  { %v172_v28 = vmul.f32 %v238_v27, %v238_v27 }
 0x15c   :  { %v154_v20 = vpop.f32.mrf.mxu0 }
 0x15d   :  { %v158_v21 = vadd.f32 %v154_v20, %v83_v19 }
 0x15e   :  { %v225_v22 = vpop.f32.mrf.mxu0 }
 0x15f   :  { %160 = vst.msk [vmem:[#allocation2] sm:$0x3] %vm50_vm5, %v158_v21 }
 0x166   :  { %v167_v23 = vld [vmem:[#allocation2] sm:$0x3] }
 0x167   :  { %v168_v24 = vmul.f32 %v167_v23, %v167_v23 }
 0x169   :  { %v169_v25 = vsel %vm50_vm5, %v168_v24, 0.0 }
 0x16a   :  { %170 = vadd.xlane.f32.xlu1 %v169_v25 }
 0x1f3   :  { %v171_v29 = vpop.xlane.xlu1 %170 }
 0x1f4   :  { %v173_v30 = vmul.f32 %v172_v28, %v171_v29 }
 0x1f6   :  { %v174_v31 = vmax.f32 %v173_v30, 1e-12 }
 0x1f8   :  { %239 = vrsqrt.f32 %v174_v31  ;;  %vm177_vm6 = vcmp.eq.f32.partialorder %v174_v31, inf  ;;  %v180_v34 = vand.u32 2147483648, %v174_v31  ;;  %vm179_vm7 = vcmp.eq.f32.partialorder %v174_v31, 0.0 }
 0x205   :  { %v240_v32 = vpop.eup %239 }
 0x206   :  { %v176_v33 = vmul.f32 %v240_v32, %v174_v31 }
 0x208   :  { %v178_v35 = vsel %vm177_vm6, %v174_v31, %v176_v33 }
 0x209   :  { %v181_v36 = vsel %vm179_vm7, %v180_v34, %v178_v35 }
 0x20a   :  { %v182_v37 = vsel %vm52_vm1, %v181_v36, 0.0 }
 0x20b   :  { %183 = vadd.xlane.f32.xlu1 %v182_v37 }
 0x294   :  { %v184_v38 = vpop.xlane.xlu1 %183 }
 0x295   :  { %v185_v39 = vrot.slane %v184_v38, 4 }
 0x297   :  { %v186_v40 = vadd.f32 %v185_v39, %v184_v38 }
 0x299   :  { %v187_v41 = vrot.slane %v186_v40, 2 }
 0x29b   :  { %v188_v42 = vadd.f32 %v187_v41, %v186_v40 }
 0x29d   :  { %v189_v43 = vrot.slane %v188_v42, 1 }
 0x29f   :  { %v190_v44 = vadd.f32 %v189_v43, %v188_v42 }
 0x2a1   :  { %226 = vpush %v190_v44 }
 0x2d2   :  { %s227_s0 = spop %226 }
 0x2d3   :  { %s192_s28 = smul.f32 0.5, %s227_s0 }
 0x2d5   :  { %194 = sst [smem:[#allocation9]] %s192_s28 }
 0x2d6   :  { %202 = dma.smem_to_hbm %s302_s29, 16, %s350_s4, [#allocation6]  }
 0x2d7   :  { %293 = dma.done.wait [#allocation6], 16  }
 0x2d8   :  { %294 = vsyncadd [#allocation6], 4294967280 }
 0x2d9   :  { %206 = sfence }
 0x2da   :  { %207 = vsyncpa [#allocation5], 1 }
 0x2db   :  { %208 = vsyncpa [#allocation8], 1 }
 0x2dc   :  { %209 = vsyncpa [#allocation6], 1 }

</bundles_post_ra>
